<compile_context>
chip_gen: v7x
topology: tpu7x:2x2x1
jax: 0.10.0
libtpu: 0.0.40
codegen_flags: <defaults>
</compile_context>

<pallas_src>
import functools
import math

import jax
import jax.numpy as jnp
from jax import lax
from jax.experimental import pallas as pl
from jax.experimental.pallas import tpu as pltpu

_EPS = 1e-5
_TARGET_ROWS = 256          # aim for MXU M-dim around the v6e/v7x native 256


def _compiler_params():
    # Raise the scoped VMEM limit to ~3/4 of physical per-core VMEM
    # (96 MiB on v5e/v6e, 48 MiB on v7x); fall back to a safe 32 MiB.
    vmem_limit = 32 * 1024 * 1024
    try:
        cap = getattr(pltpu.get_tpu_info(), "vmem_capacity_bytes", None)
        if cap:
            vmem_limit = min(100 * 1024 * 1024, (3 * int(cap)) // 4)
    except Exception:
        pass
    return pltpu.CompilerParams(
        dimension_semantics=("parallel",),
        vmem_limit_bytes=int(vmem_limit))


def _conv_stats_kernel(x_ref, m_ref, sb_ref, y_ref, st_ref, *, H, apply_act):
    """One block of B images: (optional BN affine + ReLU) -> 3x3 SAME conv
    -> partial BN statistics.

    x_ref : (B*H, WC)    lane-flattened NHWC rows (N,H on sublanes, W*Cp lanes)
    m_ref : (3, WC, WC)  per-ky banded weights (kx taps + Cin folded in), bf16
    sb_ref: (2, WC)      folded per-channel scale/bias tiled along lanes, f32
    y_ref : (B*H, WC)    conv output, f32
    st_ref: (1, 2, WC)   partial [sum, sum of squares] over the block rows
    """
    x = x_ref[...]                                        # (B*H, WC) f32
    if apply_act:
        # BN1 affine + ReLU folded into the conv2 pass.
        x = jnp.maximum(x * sb_ref[0] + sb_ref[1], 0.0)
    xb = x.astype(jnp.bfloat16)                           # bf16 operands, f32 acc

    # 3x3 conv = three matmuls, one per ky row tap; kx taps and input channels
    # live inside the banded weight matrices.  M = B*H rows per matmul.
    z0 = jnp.dot(xb, m_ref[0], preferred_element_type=jnp.float32)
    z1 = jnp.dot(xb, m_ref[1], preferred_element_type=jnp.float32)
    z2 = jnp.dot(xb, m_ref[2], preferred_element_type=jnp.float32)

    bh = z1.shape[0]
    rows = lax.broadcasted_iota(jnp.int32, z1.shape, 0)
    hmod = rows % H
    # out[h] = z0[h-1] + z1[h] + z2[h+1]; zero at each image's H boundary.
    # The shift is a sublane roll (XLU slot) + mask, so rows never bleed
    # across images and no padded rows / relayout slices are needed.
    acc = z1
    acc = acc + jnp.where(hmod == 0, 0.0, pltpu.roll(z0, 1, axis=0))
    acc = acc + jnp.where(hmod == H - 1, 0.0, pltpu.roll(z2, bh - 1, axis=0))

    y_ref[...] = acc
    # Per-block partial statistics; the global (N,H,W) reduction finishes in
    # the wrapper so the grid axis stays parallel and BN numerics stay global.
    st_ref[0, 0:1, :] = jnp.sum(acc, axis=0, keepdims=True)
    st_ref[0, 1:2, :] = jnp.sum(acc * acc, axis=0, keepdims=True)


def _bn_residual_relu_kernel(y_ref, res_ref, sb_ref, o_ref):
    """out = relu(scale2 * y2 + bias2 + residual), lane-dense layout."""
    o_ref[...] = jnp.maximum(y_ref[...] * sb_ref[0] + sb_ref[1] + res_ref[...], 0.0)


def _conv_pass(x2d, m, sb, *, H, WC, rows_per_step, apply_act):
    NH = x2d.shape[0]
    G = NH // rows_per_step
    kernel = functools.partial(_conv_stats_kernel, H=H, apply_act=apply_act)
    return pl.pallas_call(
        kernel,
        out_shape=(jax.ShapeDtypeStruct((NH, WC), jnp.float32),
                   jax.ShapeDtypeStruct((G, 2, WC), jnp.float32)),
        grid=(G,),
        in_specs=[
            pl.BlockSpec((rows_per_step, WC), lambda i: (i, 0)),
            # TODO(synk): at large WC single-buffer these grid-invariant
            # operands (pl.Buffered(1)) or hoist them into VMEM scratch.
            pl.BlockSpec((3, WC, WC), lambda i: (0, 0, 0)),
            pl.BlockSpec((2, WC), lambda i: (0, 0)),
        ],
        out_specs=(
            pl.BlockSpec((rows_per_step, WC), lambda i: (i, 0)),
            pl.BlockSpec((1, 2, WC), lambda i: (i, 0, 0)),
        ),
        compiler_params=_compiler_params(),
    )(x2d, m, sb)


def _finalize_pass(y2, res, sb2, *, WC, rows_per_step):
    NH = y2.shape[0]
    G = NH // rows_per_step
    return pl.pallas_call(
        _bn_residual_relu_kernel,
        out_shape=jax.ShapeDtypeStruct((NH, WC), jnp.float32),
        grid=(G,),
        in_specs=[
            pl.BlockSpec((rows_per_step, WC), lambda i: (i, 0)),
            pl.BlockSpec((rows_per_step, WC), lambda i: (i, 0)),
            pl.BlockSpec((2, WC), lambda i: (0, 0)),
        ],
        out_specs=pl.BlockSpec((rows_per_step, WC), lambda i: (i, 0)),
        compiler_params=_compiler_params(),
        input_output_aliases={0: 0},   # y2 is dead after this pass -> reuse its HBM
    )(y2, res, sb2)


def _banded_weights(w_oihw, W, C, Cp):
    """OIHW (C,C,3,3) -> (3, W*Cp, W*Cp) banded matrices, bf16.

    M[ky, jin*Cp+ci, j*Cp+co] = w[co, ci, ky, kx] where jin == j + kx - 1
    (missing band entries implement SAME zero padding along W; channels are
    zero-padded from C to Cp so the lane dim is a multiple of 128).
    """
    wp = jnp.pad(w_oihw.astype(jnp.float32),
                 ((0, Cp - C), (0, Cp - C), (0, 0), (0, 0)))
    wt = jnp.transpose(wp, (2, 3, 1, 0))                  # (ky, kx, ci, co)
    mats = []
    for ky in range(3):
        m = jnp.zeros((W * Cp, W * Cp), jnp.float32)
        for kx in range(3):
            band = jnp.eye(W, W, k=1 - kx, dtype=jnp.float32)
            m = m + jnp.kron(band, wt[ky, kx])
        mats.append(m)
    return jnp.stack(mats, axis=0).astype(jnp.bfloat16)


def _fold_bn(stats, gamma, beta, count, W, Cp, C):
    """Finalize training-mode BN (biased var) from per-block partial sums and
    fold it into per-lane scale/bias: (2, W*Cp) f32."""
    s = stats.reshape(-1, 2, W, Cp).sum(axis=(0, 2))      # (2, Cp)
    mean = s[0] / count
    var = jnp.maximum(s[1] / count - mean * mean, 0.0)
    gp = jnp.pad(gamma.astype(jnp.float32), (0, Cp - C))
    bp = jnp.pad(beta.astype(jnp.float32), (0, Cp - C))
    scale = gp * lax.rsqrt(var + _EPS)
    bias = bp - mean * scale
    return jnp.stack([jnp.tile(scale, W), jnp.tile(bias, W)], axis=0)


def _pick_images_per_step(N, H):
    """Images per grid step: maximize MXU M = B*H (<= ~256 rows), B | N."""
    B = max(1, min(N, _TARGET_ROWS // max(H, 1)))
    while N % B:
        B -= 1
    if (B * H) % 8 != 0 and B != N:
        B = N                      # single full-extent block is always legal
    return B


def residual_block(x_nchw, w1_oihw, w2_oihw, g1, b1, g2, b2):
    """x_nchw: (N, C, H, W); conv weights: (Cout, Cin, 3, 3) as in PyTorch."""
    N, C, H, W = x_nchw.shape
    # Pad channels so the lane (last) dim W*Cp is a multiple of 128.
    step = 128 // math.gcd(W, 128)
    Cp = ((C + step - 1) // step) * step
    WC = W * Cp
    count = N * H * W

    B = _pick_images_per_step(N, H)
    rows_per_step = B * H

    # NCHW -> NHWC, zero-pad channels, flatten (N,H) onto sublanes and (W,Cp)
    # onto lanes.  No H padding anywhere: the conv handles the H boundary
    # in-kernel, so there are no extra jnp.pad HBM round trips between passes.
    x_nhwc = jnp.transpose(x_nchw, (0, 2, 3, 1)).astype(jnp.float32)
    x_flat = jnp.pad(x_nhwc, ((0, 0), (0, 0), (0, 0), (0, Cp - C))).reshape(N * H, WC)

    m1 = _banded_weights(w1_oihw, W, C, Cp)
    m2 = _banded_weights(w2_oihw, W, C, Cp)

    # Pass 1: conv1 + partial BN1 statistics.
    sb_unused = jnp.zeros((2, WC), jnp.float32)
    y1, st1 = _conv_pass(x_flat, m1, sb_unused, H=H, WC=WC,
                         rows_per_step=rows_per_step, apply_act=False)
    sb1 = _fold_bn(st1, g1, b1, count, W, Cp, C)

    # Pass 2: BN1 affine + ReLU + conv2 + partial BN2 statistics.
    y2, st2 = _conv_pass(y1, m2, sb1, H=H, WC=WC,
                         rows_per_step=rows_per_step, apply_act=True)
    sb2 = _fold_bn(st2, g2, b2, count, W, Cp, C)

    # Pass 3: BN2 affine + residual add + ReLU (residual from the unpadded-H,
    # channel-padded input; padded channels stay exactly zero end to end).
    out_flat = _finalize_pass(y2, x_flat, sb2, WC=WC, rows_per_step=rows_per_step)

    out = out_flat.reshape(N, H, W, Cp)[..., :C]
    return jnp.transpose(out, (0, 3, 1, 2))


def _reference(x, w1, w2, g1, b1, g2, b2):
    """Pure-JAX reference mirroring the PyTorch forward (NCHW, f32)."""
    def conv(x, w):
        return lax.conv_general_dilated(
            x, w, window_strides=(1, 1), padding=[(1, 1), (1, 1)],
            dimension_numbers=('NCHW', 'OIHW', 'NCHW'))

    def bn(y, g, b):
        m = jnp.mean(y, axis=(0, 2, 3), keepdims=True)
        v = jnp.mean((y - m) ** 2, axis=(0, 2, 3), keepdims=True)
        return (y - m) * lax.rsqrt(v + _EPS) * g.reshape(1, -1, 1, 1) \
            + b.reshape(1, -1, 1, 1)

    h = jax.nn.relu(bn(conv(x, w1), g1, b1))
    y = bn(conv(h, w2), g2, b2) + x
    return jax.nn.relu(y)


if __name__ == "__main__":
    key = jax.random.PRNGKey(0)
    k1, k2, k3, k4, k5, k6, k7 = jax.random.split(key, 7)

    N, C, H, W = 2, 4, 16, 16
    x = jax.random.normal(k1, (N, C, H, W), jnp.float32)
    w1 = 0.2 * jax.random.normal(k2, (C, C, 3, 3), jnp.float32)
    w2 = 0.2 * jax.random.normal(k3, (C, C, 3, 3), jnp.float32)
    g1 = 1.0 + 0.1 * jax.random.normal(k4, (C,), jnp.float32)
    b1 = 0.1 * jax.random.normal(k5, (C,), jnp.float32)
    g2 = 1.0 + 0.1 * jax.random.normal(k6, (C,), jnp.float32)
    b2 = 0.1 * jax.random.normal(k7, (C,), jnp.float32)

    out = jax.block_until_ready(jax.jit(residual_block)(x, w1, w2, g1, b1, g2, b2))
    ref = _reference(x, w1, w2, g1, b1, g2, b2)

    assert out.shape == (N, C, H, W), out.shape
    # bf16 MXU operands (f32 accumulation, per perf review): tolerance reflects
    # bf16 rounding of conv inputs/weights; structural bugs would be >> this.
    if not jnp.allclose(out, ref, atol=6e-2, rtol=6e-2):
        max_err = float(jnp.max(jnp.abs(out - ref)))
        raise AssertionError(f"Pallas kernel mismatch vs reference, max err={max_err}")

    print("KERNEL_OK")
</pallas_src>

<mosaic_0001>
module attributes {stable_mosaic.version = 11 : i64} {
  func.func @_conv_stats_kernel(%arg0: i32, %arg1: memref<32x128xf32, #tpu.memory_space<vmem>>, %arg2: memref<3x128x128xbf16, #tpu.memory_space<vmem>>, %arg3: memref<2x128xf32, #tpu.memory_space<vmem>>, %arg4: memref<32x128xf32, #tpu.memory_space<vmem>>, %arg5: memref<1x2x128xf32, #tpu.memory_space<vmem>>) attributes {dimension_semantics = [#tpu.dimension_semantics<parallel>], iteration_bounds = array<i64: 1>, scalar_prefetch = 0 : i64, scratch_operands = 0 : i64, tpu.core_type = #tpu.core_type<tc>, window_params = [{transform_indices = @transform_0, window_bounds = array<i64: 32, 128>}, {pipeline_mode = #tpu.pipeline_mode<synchronous>, transform_indices = @transform_1, window_bounds = array<i64: 3, 128, 128>}, {pipeline_mode = #tpu.pipeline_mode<synchronous>, transform_indices = @transform_2, window_bounds = array<i64: 2, 128>}, {transform_indices = @transform_3, window_bounds = array<i64: 32, 128>}, {transform_indices = @transform_4, window_bounds = array<i64: 1, 2, 128>}]} {
    %c0 = arith.constant 0 : index
    %c0_0 = arith.constant 0 : index
    %0 = vector.load %arg1[%c0, %c0_0] : memref<32x128xf32, #tpu.memory_space<vmem>>, vector<32x128xf32>
    %1 = arith.truncf %0 : vector<32x128xf32> to vector<32x128xbf16>
    %c0_1 = arith.constant 0 : index
    %c0_2 = arith.constant 0 : index
    %c0_3 = arith.constant 0 : index
    %2 = vector.load %arg2[%c0_1, %c0_2, %c0_3] : memref<3x128x128xbf16, #tpu.memory_space<vmem>>, vector<1x128x128xbf16>
    %3 = vector.shape_cast %2 : vector<1x128x128xbf16> to vector<128x128xbf16>
    %cst = arith.constant dense<0.000000e+00> : vector<32x128xf32>
    %4 = tpu.matmul %1, %3, %cst {dimension_numbers = #tpu.dot_dimension_numbers<[1], [0], [0], [1], [0, 0, 1, 1], [], []>} : vector<32x128xbf16>, vector<128x128xbf16>, vector<32x128xf32> -> vector<32x128xf32>
    %c1 = arith.constant 1 : index
    %c0_4 = arith.constant 0 : index
    %c0_5 = arith.constant 0 : index
    %5 = vector.load %arg2[%c1, %c0_4, %c0_5] : memref<3x128x128xbf16, #tpu.memory_space<vmem>>, vector<1x128x128xbf16>
    %6 = vector.shape_cast %5 : vector<1x128x128xbf16> to vector<128x128xbf16>
    %cst_6 = arith.constant dense<0.000000e+00> : vector<32x128xf32>
    %7 = tpu.matmul %1, %6, %cst_6 {dimension_numbers = #tpu.dot_dimension_numbers<[1], [0], [0], [1], [0, 0, 1, 1], [], []>} : vector<32x128xbf16>, vector<128x128xbf16>, vector<32x128xf32> -> vector<32x128xf32>
    %c2 = arith.constant 2 : index
    %c0_7 = arith.constant 0 : index
    %c0_8 = arith.constant 0 : index
    %8 = vector.load %arg2[%c2, %c0_7, %c0_8] : memref<3x128x128xbf16, #tpu.memory_space<vmem>>, vector<1x128x128xbf16>
    %9 = vector.shape_cast %8 : vector<1x128x128xbf16> to vector<128x128xbf16>
    %cst_9 = arith.constant dense<0.000000e+00> : vector<32x128xf32>
    %10 = tpu.matmul %1, %9, %cst_9 {dimension_numbers = #tpu.dot_dimension_numbers<[1], [0], [0], [1], [0, 0, 1, 1], [], []>} : vector<32x128xbf16>, vector<128x128xbf16>, vector<32x128xf32> -> vector<32x128xf32>
    %11 = tpu.iota {dimensions = array<i32: 0>} : vector<32x128xi32>
    %c16_i32 = arith.constant 16 : i32
    %c0_i32 = arith.constant 0 : i32
    %12 = arith.cmpi eq, %c16_i32, %c0_i32 : i32
    %c1_i32 = arith.constant 1 : i32
    %13 = arith.select %12, %c1_i32, %c16_i32 : i32
    %14 = vector.broadcast %13 : i32 to vector<32x128xi32>
    %15 = arith.remsi %11, %14 : vector<32x128xi32>
    %c0_i32_10 = arith.constant 0 : i32
    %16 = vector.broadcast %c0_i32_10 : i32 to vector<32x128xi32>
    %17 = arith.cmpi ne, %15, %16 : vector<32x128xi32>
    %c0_i32_11 = arith.constant 0 : i32
    %18 = vector.broadcast %c0_i32_11 : i32 to vector<32x128xi32>
    %19 = arith.cmpi slt, %15, %18 : vector<32x128xi32>
    %c0_i32_12 = arith.constant 0 : i32
    %20 = arith.cmpi slt, %13, %c0_i32_12 : i32
    %21 = vector.broadcast %20 : i1 to vector<32x128xi1>
    %22 = vector.broadcast %21 : vector<32x128xi1> to vector<32x128xi1>
    %23 = arith.xori %19, %22 : vector<32x128xi1>
    %24 = arith.andi %23, %17 : vector<32x128xi1>
    %25 = vector.broadcast %13 : i32 to vector<32x128xi32>
    %26 = arith.addi %15, %25 : vector<32x128xi32>
    %27 = arith.select %24, %26, %15 : vector<32x128xi1>, vector<32x128xi32>
    %c0_i32_13 = arith.constant 0 : i32
    %28 = vector.broadcast %c0_i32_13 : i32 to vector<32x128xi32>
    %29 = arith.cmpi eq, %27, %28 : vector<32x128xi32>
    %c1_i32_14 = arith.constant 1 : i32
    %30 = tpu.dynamic_rotate %4 by %c1_i32_14 dim 0 : vector<32x128xf32>, i32 -> vector<32x128xf32>
    %cst_15 = arith.constant 0.000000e+00 : f32
    %31 = vector.broadcast %cst_15 : f32 to vector<32x128xf32>
    %32 = arith.select %29, %31, %30 : vector<32x128xi1>, vector<32x128xf32>
    %33 = arith.addf %7, %32 : vector<32x128xf32>
    %c15_i32 = arith.constant 15 : i32
    %34 = vector.broadcast %c15_i32 : i32 to vector<32x128xi32>
    %35 = arith.cmpi eq, %27, %34 : vector<32x128xi32>
    %c31_i32 = arith.constant 31 : i32
    %36 = tpu.dynamic_rotate %10 by %c31_i32 dim 0 : vector<32x128xf32>, i32 -> vector<32x128xf32>
    %cst_16 = arith.constant 0.000000e+00 : f32
    %37 = vector.broadcast %cst_16 : f32 to vector<32x128xf32>
    %38 = arith.select %35, %37, %36 : vector<32x128xi1>, vector<32x128xf32>
    %39 = arith.addf %33, %38 : vector<32x128xf32>
    %c0_17 = arith.constant 0 : index
    %c0_18 = arith.constant 0 : index
    %40 = vector.load %arg4[%c0_17, %c0_18] : memref<32x128xf32, #tpu.memory_space<vmem>>, vector<32x128xf32>
    tpu.vector_store %arg4[%c0_17, %c0_18], %39 {strides = array<i32>} : memref<32x128xf32, #tpu.memory_space<vmem>>, vector<32x128xf32>,
    %cst_19 = arith.constant dense<0.000000e+00> : vector<128xf32>
    %41 = vector.multi_reduction <add>, %39, %cst_19 [0] : vector<32x128xf32> to vector<128xf32>
    %42 = vector.shape_cast %41 : vector<128xf32> to vector<1x128xf32>
    %c0_20 = arith.constant 0 : index
    %c0_21 = arith.constant 0 : index
    %c0_22 = arith.constant 0 : index
    %43 = vector.load %arg5[%c0_20, %c0_21, %c0_22] : memref<1x2x128xf32, #tpu.memory_space<vmem>>, vector<1x1x128xf32>
    %44 = vector.shape_cast %43 : vector<1x1x128xf32> to vector<1x128xf32>
    %45 = vector.shape_cast %42 : vector<1x128xf32> to vector<1x1x128xf32>
    tpu.vector_store %arg5[%c0_20, %c0_21, %c0_22], %45 {strides = array<i32>} : memref<1x2x128xf32, #tpu.memory_space<vmem>>, vector<1x1x128xf32>,
    %46 = arith.mulf %39, %39 : vector<32x128xf32>
    %cst_23 = arith.constant dense<0.000000e+00> : vector<128xf32>
    %47 = vector.multi_reduction <add>, %46, %cst_23 [0] : vector<32x128xf32> to vector<128xf32>
    %48 = vector.shape_cast %47 : vector<128xf32> to vector<1x128xf32>
    %c0_24 = arith.constant 0 : index
    %c1_25 = arith.constant 1 : index
    %c0_26 = arith.constant 0 : index
    %49 = vector.load %arg5[%c0_24, %c1_25, %c0_26] : memref<1x2x128xf32, #tpu.memory_space<vmem>>, vector<1x1x128xf32>
    %50 = vector.shape_cast %49 : vector<1x1x128xf32> to vector<1x128xf32>
    %51 = vector.shape_cast %48 : vector<1x128xf32> to vector<1x1x128xf32>
    tpu.vector_store %arg5[%c0_24, %c1_25, %c0_26], %51 {strides = array<i32>} : memref<1x2x128xf32, #tpu.memory_space<vmem>>, vector<1x1x128xf32>,
    return
  }
  func.func @transform_0(%arg0: i32) -> (i32, i32) {
    %c0_i32 = arith.constant 0 : i32
    %c0_i32_0 = arith.constant 0 : i32
    return %arg0, %c0_i32 : i32, i32
  }
  func.func @transform_1(%arg0: i32) -> (i32, i32, i32) {
    %c0_i32 = arith.constant 0 : i32
    %c0_i32_0 = arith.constant 0 : i32
    %c0_i32_1 = arith.constant 0 : i32
    %c0_i32_2 = arith.constant 0 : i32
    return %c0_i32, %c0_i32_0, %c0_i32_1 : i32, i32, i32
  }
  func.func @transform_2(%arg0: i32) -> (i32, i32) {
    %c0_i32 = arith.constant 0 : i32
    %c0_i32_0 = arith.constant 0 : i32
    %c0_i32_1 = arith.constant 0 : i32
    return %c0_i32, %c0_i32_0 : i32, i32
  }
  func.func @transform_3(%arg0: i32) -> (i32, i32) {
    %c0_i32 = arith.constant 0 : i32
    %c0_i32_0 = arith.constant 0 : i32
    return %arg0, %c0_i32 : i32, i32
  }
  func.func @transform_4(%arg0: i32) -> (i32, i32, i32) {
    %c0_i32 = arith.constant 0 : i32
    %c0_i32_0 = arith.constant 0 : i32
    %c0_i32_1 = arith.constant 0 : i32
    return %arg0, %c0_i32, %c0_i32_0 : i32, i32, i32
  }
}

module attributes {stable_mosaic.version = 11 : i64} {
  func.func @_conv_stats_kernel(%arg0: i32, %arg1: memref<32x128xf32, #tpu.memory_space<vmem>>, %arg2: memref<3x128x128xbf16, #tpu.memory_space<vmem>>, %arg3: memref<2x128xf32, #tpu.memory_space<vmem>>, %arg4: memref<32x128xf32, #tpu.memory_space<vmem>>, %arg5: memref<1x2x128xf32, #tpu.memory_space<vmem>>) attributes {dimension_semantics = [#tpu.dimension_semantics<parallel>], iteration_bounds = array<i64: 1>, scalar_prefetch = 0 : i64, scratch_operands = 0 : i64, tpu.core_type = #tpu.core_type<tc>, window_params = [{transform_indices = @transform_0, window_bounds = array<i64: 32, 128>}, {pipeline_mode = #tpu.pipeline_mode<synchronous>, transform_indices = @transform_1, window_bounds = array<i64: 3, 128, 128>}, {pipeline_mode = #tpu.pipeline_mode<synchronous>, transform_indices = @transform_2, window_bounds = array<i64: 2, 128>}, {transform_indices = @transform_3, window_bounds = array<i64: 32, 128>}, {transform_indices = @transform_4, window_bounds = array<i64: 1, 2, 128>}]} {
    %c0 = arith.constant 0 : index
    %c0_0 = arith.constant 0 : index
    %0 = vector.load %arg1[%c0, %c0_0] : memref<32x128xf32, #tpu.memory_space<vmem>>, vector<32x128xf32>
    %c0_1 = arith.constant 0 : index
    %c0_2 = arith.constant 0 : index
    %1 = vector.load %arg3[%c0_1, %c0_2] : memref<2x128xf32, #tpu.memory_space<vmem>>, vector<1x128xf32>
    %2 = vector.shape_cast %1 : vector<1x128xf32> to vector<128xf32>
    %3 = vector.shape_cast %2 : vector<128xf32> to vector<1x128xf32>
    %4 = vector.broadcast %3 : vector<1x128xf32> to vector<32x128xf32>
    %5 = arith.mulf %0, %4 : vector<32x128xf32>
    %c1 = arith.constant 1 : index
    %c0_3 = arith.constant 0 : index
    %6 = vector.load %arg3[%c1, %c0_3] : memref<2x128xf32, #tpu.memory_space<vmem>>, vector<1x128xf32>
    %7 = vector.shape_cast %6 : vector<1x128xf32> to vector<128xf32>
    %8 = vector.shape_cast %7 : vector<128xf32> to vector<1x128xf32>
    %9 = vector.broadcast %8 : vector<1x128xf32> to vector<32x128xf32>
    %10 = arith.addf %5, %9 : vector<32x128xf32>
    %cst = arith.constant 0.000000e+00 : f32
    %11 = vector.broadcast %cst : f32 to vector<32x128xf32>
    %12 = arith.maximumf %10, %11 : vector<32x128xf32>
    %13 = arith.truncf %12 : vector<32x128xf32> to vector<32x128xbf16>
    %c0_4 = arith.constant 0 : index
    %c0_5 = arith.constant 0 : index
    %c0_6 = arith.constant 0 : index
    %14 = vector.load %arg2[%c0_4, %c0_5, %c0_6] : memref<3x128x128xbf16, #tpu.memory_space<vmem>>, vector<1x128x128xbf16>
    %15 = vector.shape_cast %14 : vector<1x128x128xbf16> to vector<128x128xbf16>
    %cst_7 = arith.constant dense<0.000000e+00> : vector<32x128xf32>
    %16 = tpu.matmul %13, %15, %cst_7 {dimension_numbers = #tpu.dot_dimension_numbers<[1], [0], [0], [1], [0, 0, 1, 1], [], []>} : vector<32x128xbf16>, vector<128x128xbf16>, vector<32x128xf32> -> vector<32x128xf32>
    %c1_8 = arith.constant 1 : index
    %c0_9 = arith.constant 0 : index
    %c0_10 = arith.constant 0 : index
    %17 = vector.load %arg2[%c1_8, %c0_9, %c0_10] : memref<3x128x128xbf16, #tpu.memory_space<vmem>>, vector<1x128x128xbf16>
    %18 = vector.shape_cast %17 : vector<1x128x128xbf16> to vector<128x128xbf16>
    %cst_11 = arith.constant dense<0.000000e+00> : vector<32x128xf32>
    %19 = tpu.matmul %13, %18, %cst_11 {dimension_numbers = #tpu.dot_dimension_numbers<[1], [0], [0], [1], [0, 0, 1, 1], [], []>} : vector<32x128xbf16>, vector<128x128xbf16>, vector<32x128xf32> -> vector<32x128xf32>
    %c2 = arith.constant 2 : index
    %c0_12 = arith.constant 0 : index
    %c0_13 = arith.constant 0 : index
    %20 = vector.load %arg2[%c2, %c0_12, %c0_13] : memref<3x128x128xbf16, #tpu.memory_space<vmem>>, vector<1x128x128xbf16>
    %21 = vector.shape_cast %20 : vector<1x128x128xbf16> to vector<128x128xbf16>
    %cst_14 = arith.constant dense<0.000000e+00> : vector<32x128xf32>
    %22 = tpu.matmul %13, %21, %cst_14 {dimension_numbers = #tpu.dot_dimension_numbers<[1], [0], [0], [1], [0, 0, 1, 1], [], []>} : vector<32x128xbf16>, vector<128x128xbf16>, vector<32x128xf32> -> vector<32x128xf32>
    %23 = tpu.iota {dimensions = array<i32: 0>} : vector<32x128xi32>
    %c16_i32 = arith.constant 16 : i32
    %c0_i32 = arith.constant 0 : i32
    %24 = arith.cmpi eq, %c16_i32, %c0_i32 : i32
    %c1_i32 = arith.constant 1 : i32
    %25 = arith.select %24, %c1_i32, %c16_i32 : i32
    %26 = vector.broadcast %25 : i32 to vector<32x128xi32>
    %27 = arith.remsi %23, %26 : vector<32x128xi32>
    %c0_i32_15 = arith.constant 0 : i32
    %28 = vector.broadcast %c0_i32_15 : i32 to vector<32x128xi32>
    %29 = arith.cmpi ne, %27, %28 : vector<32x128xi32>
    %c0_i32_16 = arith.constant 0 : i32
    %30 = vector.broadcast %c0_i32_16 : i32 to vector<32x128xi32>
    %31 = arith.cmpi slt, %27, %30 : vector<32x128xi32>
    %c0_i32_17 = arith.constant 0 : i32
    %32 = arith.cmpi slt, %25, %c0_i32_17 : i32
    %33 = vector.broadcast %32 : i1 to vector<32x128xi1>
    %34 = vector.broadcast %33 : vector<32x128xi1> to vector<32x128xi1>
    %35 = arith.xori %31, %34 : vector<32x128xi1>
    %36 = arith.andi %35, %29 : vector<32x128xi1>
    %37 = vector.broadcast %25 : i32 to vector<32x128xi32>
    %38 = arith.addi %27, %37 : vector<32x128xi32>
    %39 = arith.select %36, %38, %27 : vector<32x128xi1>, vector<32x128xi32>
    %c0_i32_18 = arith.constant 0 : i32
    %40 = vector.broadcast %c0_i32_18 : i32 to vector<32x128xi32>
    %41 = arith.cmpi eq, %39, %40 : vector<32x128xi32>
    %c1_i32_19 = arith.constant 1 : i32
    %42 = tpu.dynamic_rotate %16 by %c1_i32_19 dim 0 : vector<32x128xf32>, i32 -> vector<32x128xf32>
    %cst_20 = arith.constant 0.000000e+00 : f32
    %43 = vector.broadcast %cst_20 : f32 to vector<32x128xf32>
    %44 = arith.select %41, %43, %42 : vector<32x128xi1>, vector<32x128xf32>
    %45 = arith.addf %19, %44 : vector<32x128xf32>
    %c15_i32 = arith.constant 15 : i32
    %46 = vector.broadcast %c15_i32 : i32 to vector<32x128xi32>
    %47 = arith.cmpi eq, %39, %46 : vector<32x128xi32>
    %c31_i32 = arith.constant 31 : i32
    %48 = tpu.dynamic_rotate %22 by %c31_i32 dim 0 : vector<32x128xf32>, i32 -> vector<32x128xf32>
    %cst_21 = arith.constant 0.000000e+00 : f32
    %49 = vector.broadcast %cst_21 : f32 to vector<32x128xf32>
    %50 = arith.select %47, %49, %48 : vector<32x128xi1>, vector<32x128xf32>
    %51 = arith.addf %45, %50 : vector<32x128xf32>
    %c0_22 = arith.constant 0 : index
    %c0_23 = arith.constant 0 : index
    %52 = vector.load %arg4[%c0_22, %c0_23] : memref<32x128xf32, #tpu.memory_space<vmem>>, vector<32x128xf32>
    tpu.vector_store %arg4[%c0_22, %c0_23], %51 {strides = array<i32>} : memref<32x128xf32, #tpu.memory_space<vmem>>, vector<32x128xf32>,
    %cst_24 = arith.constant dense<0.000000e+00> : vector<128xf32>
    %53 = vector.multi_reduction <add>, %51, %cst_24 [0] : vector<32x128xf32> to vector<128xf32>
    %54 = vector.shape_cast %53 : vector<128xf32> to vector<1x128xf32>
    %c0_25 = arith.constant 0 : index
    %c0_26 = arith.constant 0 : index
    %c0_27 = arith.constant 0 : index
    %55 = vector.load %arg5[%c0_25, %c0_26, %c0_27] : memref<1x2x128xf32, #tpu.memory_space<vmem>>, vector<1x1x128xf32>
    %56 = vector.shape_cast %55 : vector<1x1x128xf32> to vector<1x128xf32>
    %57 = vector.shape_cast %54 : vector<1x128xf32> to vector<1x1x128xf32>
    tpu.vector_store %arg5[%c0_25, %c0_26, %c0_27], %57 {strides = array<i32>} : memref<1x2x128xf32, #tpu.memory_space<vmem>>, vector<1x1x128xf32>,
    %58 = arith.mulf %51, %51 : vector<32x128xf32>
    %cst_28 = arith.constant dense<0.000000e+00> : vector<128xf32>
    %59 = vector.multi_reduction <add>, %58, %cst_28 [0] : vector<32x128xf32> to vector<128xf32>
    %60 = vector.shape_cast %59 : vector<128xf32> to vector<1x128xf32>
    %c0_29 = arith.constant 0 : index
    %c1_30 = arith.constant 1 : index
    %c0_31 = arith.constant 0 : index
    %61 = vector.load %arg5[%c0_29, %c1_30, %c0_31] : memref<1x2x128xf32, #tpu.memory_space<vmem>>, vector<1x1x128xf32>
    %62 = vector.shape_cast %61 : vector<1x1x128xf32> to vector<1x128xf32>
    %63 = vector.shape_cast %60 : vector<1x128xf32> to vector<1x1x128xf32>
    tpu.vector_store %arg5[%c0_29, %c1_30, %c0_31], %63 {strides = array<i32>} : memref<1x2x128xf32, #tpu.memory_space<vmem>>, vector<1x1x128xf32>,
    return
  }
  func.func @transform_0(%arg0: i32) -> (i32, i32) {
    %c0_i32 = arith.constant 0 : i32
    %c0_i32_0 = arith.constant 0 : i32
    return %arg0, %c0_i32 : i32, i32
  }
  func.func @transform_1(%arg0: i32) -> (i32, i32, i32) {
    %c0_i32 = arith.constant 0 : i32
    %c0_i32_0 = arith.constant 0 : i32
    %c0_i32_1 = arith.constant 0 : i32
    %c0_i32_2 = arith.constant 0 : i32
    return %c0_i32, %c0_i32_0, %c0_i32_1 : i32, i32, i32
  }
  func.func @transform_2(%arg0: i32) -> (i32, i32) {
    %c0_i32 = arith.constant 0 : i32
    %c0_i32_0 = arith.constant 0 : i32
    %c0_i32_1 = arith.constant 0 : i32
    return %c0_i32, %c0_i32_0 : i32, i32
  }
  func.func @transform_3(%arg0: i32) -> (i32, i32) {
    %c0_i32 = arith.constant 0 : i32
    %c0_i32_0 = arith.constant 0 : i32
    return %arg0, %c0_i32 : i32, i32
  }
  func.func @transform_4(%arg0: i32) -> (i32, i32, i32) {
    %c0_i32 = arith.constant 0 : i32
    %c0_i32_0 = arith.constant 0 : i32
    %c0_i32_1 = arith.constant 0 : i32
    return %arg0, %c0_i32, %c0_i32_0 : i32, i32, i32
  }
}

module attributes {stable_mosaic.version = 11 : i64} {
  func.func @_bn_residual_relu_kernel(%arg0: i32, %arg1: memref<32x128xf32, #tpu.memory_space<vmem>>, %arg2: memref<32x128xf32, #tpu.memory_space<vmem>>, %arg3: memref<2x128xf32, #tpu.memory_space<vmem>>, %arg4: memref<32x128xf32, #tpu.memory_space<vmem>>) attributes {dimension_semantics = [#tpu.dimension_semantics<parallel>], iteration_bounds = array<i64: 1>, scalar_prefetch = 0 : i64, scratch_operands = 0 : i64, tpu.core_type = #tpu.core_type<tc>, window_params = [{transform_indices = @transform_0, window_bounds = array<i64: 32, 128>}, {transform_indices = @transform_1, window_bounds = array<i64: 32, 128>}, {pipeline_mode = #tpu.pipeline_mode<synchronous>, transform_indices = @transform_2, window_bounds = array<i64: 2, 128>}, {transform_indices = @transform_3, window_bounds = array<i64: 32, 128>}]} {
    %c0 = arith.constant 0 : index
    %c0_0 = arith.constant 0 : index
    %0 = vector.load %arg1[%c0, %c0_0] : memref<32x128xf32, #tpu.memory_space<vmem>>, vector<32x128xf32>
    %c0_1 = arith.constant 0 : index
    %c0_2 = arith.constant 0 : index
    %1 = vector.load %arg3[%c0_1, %c0_2] : memref<2x128xf32, #tpu.memory_space<vmem>>, vector<1x128xf32>
    %2 = vector.shape_cast %1 : vector<1x128xf32> to vector<128xf32>
    %3 = vector.shape_cast %2 : vector<128xf32> to vector<1x128xf32>
    %4 = vector.broadcast %3 : vector<1x128xf32> to vector<32x128xf32>
    %5 = arith.mulf %0, %4 : vector<32x128xf32>
    %c1 = arith.constant 1 : index
    %c0_3 = arith.constant 0 : index
    %6 = vector.load %arg3[%c1, %c0_3] : memref<2x128xf32, #tpu.memory_space<vmem>>, vector<1x128xf32>
    %7 = vector.shape_cast %6 : vector<1x128xf32> to vector<128xf32>
    %8 = vector.shape_cast %7 : vector<128xf32> to vector<1x128xf32>
    %9 = vector.broadcast %8 : vector<1x128xf32> to vector<32x128xf32>
    %10 = arith.addf %5, %9 : vector<32x128xf32>
    %c0_4 = arith.constant 0 : index
    %c0_5 = arith.constant 0 : index
    %11 = vector.load %arg2[%c0_4, %c0_5] : memref<32x128xf32, #tpu.memory_space<vmem>>, vector<32x128xf32>
    %12 = arith.addf %10, %11 : vector<32x128xf32>
    %cst = arith.constant 0.000000e+00 : f32
    %13 = vector.broadcast %cst : f32 to vector<32x128xf32>
    %14 = arith.maximumf %12, %13 : vector<32x128xf32>
    %c0_6 = arith.constant 0 : index
    %c0_7 = arith.constant 0 : index
    %15 = vector.load %arg4[%c0_6, %c0_7] : memref<32x128xf32, #tpu.memory_space<vmem>>, vector<32x128xf32>
    tpu.vector_store %arg4[%c0_6, %c0_7], %14 {strides = array<i32>} : memref<32x128xf32, #tpu.memory_space<vmem>>, vector<32x128xf32>,
    return
  }
  func.func @transform_0(%arg0: i32) -> (i32, i32) {
    %c0_i32 = arith.constant 0 : i32
    %c0_i32_0 = arith.constant 0 : i32
    return %arg0, %c0_i32 : i32, i32
  }
  func.func @transform_1(%arg0: i32) -> (i32, i32) {
    %c0_i32 = arith.constant 0 : i32
    %c0_i32_0 = arith.constant 0 : i32
    return %arg0, %c0_i32 : i32, i32
  }
  func.func @transform_2(%arg0: i32) -> (i32, i32) {
    %c0_i32 = arith.constant 0 : i32
    %c0_i32_0 = arith.constant 0 : i32
    %c0_i32_1 = arith.constant 0 : i32
    return %c0_i32, %c0_i32_0 : i32, i32
  }
  func.func @transform_3(%arg0: i32) -> (i32, i32) {
    %c0_i32 = arith.constant 0 : i32
    %c0_i32_0 = arith.constant 0 : i32
    return %arg0, %c0_i32 : i32, i32
  }
}

</mosaic_0001>

<bundles_post_ra>
// kernel: tile.23
= control target key start
LH: loop header
LB: loop body
LE: loop exit
PB: predicated region body
PF: predicated region fallthrough
CT: control target
= control target key end

     0   :  { %s28_s0 = inlined_call_operand.vmem [shape: f32[8], index: 0, kind: input, shape index: {}]   ;;  %s29_s1 = inlined_call_operand.vmem [shape: f32[16,8], index: 1, kind: output, shape index: {}]  }
   0x1   :  { %v4_v0 = vld [vmem:[%s28_s0] ss:$0 sm:$0xff] }
   0x2   :  { %5 = vst [vmem:[%s29_s1] sm:$0xff] %v4_v0  ;;  %8 = vst [vmem:[%s29_s1 + $0x8] sm:$0xff] %v4_v0 }

// kernel: tile.28
= control target key start
LH: loop header
LB: loop body
LE: loop exit
PB: predicated region body
PF: predicated region fallthrough
CT: control target
= control target key end

     0   :  { %s131_s10 = smov 120   ;;  %s132_s11 = smov 104   ;;  %vm3_vm0 = vcmask 64512   ;;  %vm9_vm1 = vcmask 1048512   ;;  %vm15_vm2 = vcmask 982912   ;;  %vm21_vm3 = vcmask 917312   ;;  %s207_s0 = inlined_call_operand.vmem [shape: f32[16,8], index: 0, kind: input, shape index: {}]   ;;  %s208_s1 = inlined_call_operand.vmem [shape: f32[1,128], index: 1, kind: output, shape index: {}]  }
   0x1   :  { %v101_v0 = vld [vmem:[%s207_s0 + $0xf] sm:$0x1]   ;;  %v103_v1 = vld [vmem:[%s207_s0 + $0xd] sm:$0x1]   ;;  %v102_v2 = vld [vmem:[%s207_s0 + $0xe] sm:$0x1]  }
   0x2   :  { %7 = vrot.lane.b32.xlu0 %v101_v0, %s131_s10  ;;  %19 = vrot.lane.b32.xlu1 %v103_v1, %s132_s11  ;;  %v104_v3 = vld [vmem:[%s207_s0 + $0xc] sm:$0x1]   ;;  %s133_s16 = smov 112   ;;  %s134_s17 = smov 96   ;;  %v105_v4 = vld [vmem:[%s207_s0 + $0xb] sm:$0x1]  }
   0x3   :  { %v106_v5 = vld [vmem:[%s207_s0 + $0xa] sm:$0x1]   ;;  %v2_v6 = vld [vmem:[%s207_s0] sm:$0x1]   ;;  %s135_s24 = smov 88   ;;  %s136_s25 = smov 80  }
   0x4   :  { %4 = vst.msk [vmem:[#allocation0] sm:$0x1] %vm3_vm0, %v2_v6   ;;  %v107_v7 = vld [vmem:[%s207_s0 + $0x9] sm:$0x1]   ;;  %v108_v8 = vld [vmem:[%s207_s0 + $0x8] sm:$0x1]  }
   0x5   :  { %s137_s30 = smov 72   ;;  %s138_s2 = smov 64   ;;  %v109_v9 = vld [vmem:[%s207_s0 + $0x7] sm:$0x1]   ;;  %v110_v10 = vld [vmem:[%s207_s0 + $0x6] sm:$0x1]  }
   0x6   :  { %13 = vrot.lane.b32.xlu0 %v102_v2, %s133_s16  ;;  %25 = vrot.lane.b32.xlu1 %v104_v3, %s134_s17  ;;  %s139_s7 = smov 56   ;;  %s140_s8 = smov 48   ;;  %v111_v11 = vld [vmem:[%s207_s0 + $0x5] sm:$0x1]   ;;  %v112_v12 = vld [vmem:[%s207_s0 + $0x4] sm:$0x1]  }
   0x7   :  { %s141_s13 = smov 40   ;;  %s142_s14 = smov 32   ;;  %v113_v13 = vld [vmem:[%s207_s0 + $0x3] sm:$0x1]   ;;  %v114_v14 = vld [vmem:[%s207_s0 + $0x2] sm:$0x1]  }
   0x8   :  { %s143_s19 = smov 24   ;;  %s144_s20 = smov 16   ;;  %v115_v15 = vld [vmem:[%s207_s0 + $0x1] sm:$0x1]   ;;  %vm27_vm4 = vcmask 851712   ;;  %vm33_vm5 = vcmask 786112  }
   0x9   :  { %s145_s0 = smov 8   ;;  %vm39_vm6 = vcmask 720512   ;;  %vm45_vm7 = vcmask 654912   ;;  %vm51_vm8 = vcmask 589312   ;;  %vm57_vm9 = vcmask 523712  }
   0xa   :  { %31 = vrot.lane.b32.xlu0 %v105_v4, %s135_s24  ;;  %37 = vrot.lane.b32.xlu1 %v106_v5, %s136_s25  ;;  %vm63_vm10 = vcmask 458112   ;;  %vm69_vm11 = vcmask 392512   ;;  %vm75_vm12 = vcmask 326912   ;;  %vm81_vm13 = vcmask 261312  }
   0xb   :  { %vm87_vm14 = vcmask 195712   ;;  %vm93_vm15 = vcmask 130112  }
   0xe   :  { %43 = vrot.lane.b32.xlu0 %v107_v7, %s137_s30  ;;  %49 = vrot.lane.b32.xlu1 %v108_v8, %s138_s2 }
  0x12   :  { %55 = vrot.lane.b32.xlu0 %v109_v9, %s139_s7  ;;  %61 = vrot.lane.b32.xlu1 %v110_v10, %s140_s8 }
  0x16   :  { %67 = vrot.lane.b32.xlu0 %v111_v11, %s141_s13  ;;  %73 = vrot.lane.b32.xlu1 %v112_v12, %s142_s14 }
  0x1a   :  { %79 = vrot.lane.b32.xlu0 %v113_v13, %s143_s19  ;;  %85 = vrot.lane.b32.xlu1 %v114_v14, %s144_s20 }
  0x1e   :  { %91 = vrot.lane.b32.xlu0 %v115_v15, %s145_s0 }
  0x74   :  { %v8_v16 = vpop.permute.xlu0 %7   ;;  %v20_v17 = vpop.permute.xlu1 %19  }
  0x75   :  { %10 = vst.msk [vmem:[#allocation0] sm:$0x1] %vm9_vm1, %v8_v16  }
  0x78   :  { %v14_v18 = vpop.permute.xlu0 %13   ;;  %v26_v19 = vpop.permute.xlu1 %25  }
  0x79   :  { %16 = vst.msk [vmem:[#allocation0] sm:$0x1] %vm15_vm2, %v14_v18  }
  0x7a   :  { %22 = vst.msk [vmem:[#allocation0] sm:$0x1] %vm21_vm3, %v20_v17  }
  0x7b   :  { %28 = vst.msk [vmem:[#allocation0] sm:$0x1] %vm27_vm4, %v26_v19  }
  0x7c   :  { %v32_v20 = vpop.permute.xlu0 %31   ;;  %v38_v21 = vpop.permute.xlu1 %37  }
  0x7d   :  { %34 = vst.msk [vmem:[#allocation0] sm:$0x1] %vm33_vm5, %v32_v20  }
  0x7e   :  { %40 = vst.msk [vmem:[#allocation0] sm:$0x1] %vm39_vm6, %v38_v21  }
  0x80   :  { %v44_v22 = vpop.permute.xlu0 %43   ;;  %v50_v23 = vpop.permute.xlu1 %49  }
  0x81   :  { %46 = vst.msk [vmem:[#allocation0] sm:$0x1] %vm45_vm7, %v44_v22  }
  0x82   :  { %52 = vst.msk [vmem:[#allocation0] sm:$0x1] %vm51_vm8, %v50_v23  }
  0x84   :  { %v56_v24 = vpop.permute.xlu0 %55   ;;  %v62_v25 = vpop.permute.xlu1 %61  }
  0x85   :  { %58 = vst.msk [vmem:[#allocation0] sm:$0x1] %vm57_vm9, %v56_v24  }
  0x86   :  { %64 = vst.msk [vmem:[#allocation0] sm:$0x1] %vm63_vm10, %v62_v25  }
  0x88   :  { %v68_v26 = vpop.permute.xlu0 %67   ;;  %v74_v27 = vpop.permute.xlu1 %73  }
  0x89   :  { %70 = vst.msk [vmem:[#allocation0] sm:$0x1] %vm69_vm11, %v68_v26  }
  0x8a   :  { %76 = vst.msk [vmem:[#allocation0] sm:$0x1] %vm75_vm12, %v74_v27  }
  0x8c   :  { %v80_v28 = vpop.permute.xlu0 %79   ;;  %v86_v29 = vpop.permute.xlu1 %85  }
  0x8d   :  { %82 = vst.msk [vmem:[#allocation0] sm:$0x1] %vm81_vm13, %v80_v28  }
  0x8e   :  { %88 = vst.msk [vmem:[#allocation0] sm:$0x1] %vm87_vm14, %v86_v29  }
  0x90   :  { %v92_v30 = vpop.permute.xlu0 %91  }
  0x91   :  { %94 = vst.msk [vmem:[#allocation0] sm:$0x1] %vm93_vm15, %v92_v30  }
  0x98   :  { %v98_v31 = vld [vmem:[#allocation0] sm:$0x1] }
  0x99   :  { %100 = vst [vmem:[%s208_s1] sm:$0x1] %v98_v31 }

// kernel: residual_block.3
= control target key start
LH: loop header
LB: loop body
LE: loop exit
PB: predicated region body
PF: predicated region fallthrough
CT: control target
= control target key end

     0   :  { %v267_v30 = vlaneseq  ;;  %s788_s1 = inlined_call_operand.vmem [shape: bf16[3,128,128], index: 1, kind: input, shape index: {}]   ;;  %s789_s2 = inlined_call_operand.vmem [shape: f32[2,128], index: 2, kind: input, shape index: {}]   ;;  %s790_s0 = inlined_call_operand.vmem [shape: f32[32,128], index: 0, kind: input, shape index: {}]   ;;  %s791_s3 = inlined_call_operand.vmem [shape: f32[32,128], index: 3, kind: output, shape index: {0}]   ;;  %s792_s4 = inlined_call_operand.vmem [shape: f32[1,2,128], index: 4, kind: output, shape index: {1}]  }
   0x1   :  { %v637_v0 = vld [vmem:[%s788_s1] sm:$0xff]   ;;  %v638_v1 = vld [vmem:[%s788_s1 + $0x8] sm:$0xff]   ;;  %v639_v2 = vld [vmem:[%s788_s1 + $0x10] sm:$0xff]  }
   0x2   :  { %577 = vmatprep.subr.bf16.mxu0 %v637_v0  ;;  %v644_v3 = vld [vmem:[%s788_s1 + $0x80] sm:$0xff]   ;;  %v640_v4 = vld [vmem:[%s788_s1 + $0x18] sm:$0xff]   ;;  %v18_v6 = vld [vmem:[%s790_s0 + $0x8] sm:$0xff]  ;;  %v268_v32 = vshrl.u32 %v267_v30, 7 }
   0x3   :  { %578 = vmatpush3.bf16.msra.mxu0 %v637_v0  ;;  %597 = vmatprep.subr.bf16.mxu1 %v644_v3  ;;  %v17_v5 = vld [vmem:[%s790_s0] sm:$0xff]  ;;  %v646_v8 = vld [vmem:[%s788_s1 + $0x88] sm:$0xff]   ;;  %v648_v10 = vld [vmem:[%s788_s1 + $0x90] sm:$0xff]  }
   0x4   :  { %579 = vmatprep.subr.bf16.mxu0 %v638_v1  ;;  %598 = vmatpush3.bf16.msra.mxu1 %v644_v3  ;;  %v21_v7 = vpack.c.bf16 %v18_v6, %v17_v5  ;;  %v641_v9 = vld [vmem:[%s788_s1 + $0x20] sm:$0xff]   ;;  %v650_v11 = vld [vmem:[%s788_s1 + $0x98] sm:$0xff]   ;;  %v642_v12 = vld [vmem:[%s788_s1 + $0x28] sm:$0xff]   ;;  %vm328_vm0 = vcmp.lt.s32.totalorder %v268_v32, 1  ;;  %vm442_vm1 = vcmp.lt.s32.totalorder %v268_v32, 7  ;;  %v270_v56 = vadd.s32 16, %v268_v32 }
   0x5   :  { %599 = vmatprep.subr.bf16.mxu1 %v646_v8  ;;  %v652_v13 = vld [vmem:[%s788_s1 + $0xa0] sm:$0xff]   ;;  %v643_v14 = vld [vmem:[%s788_s1 + $0x30] sm:$0xff]   ;;  %v654_v15 = vld [vmem:[%s788_s1 + $0xa8] sm:$0xff]   ;;  %v271_v58 = vadd.s32 24, %v268_v32  ;;  %v276_v59 = vand.u32 15, %v268_v32  ;;  %v269_v60 = vadd.s32 8, %v268_v32 }
   0x6   :  { %593 = vmatprep.mubr.bf16.mxu0 %v21_v7  ;;  %613 = vmatprep.mubr.bf16.mxu1 %v21_v7  ;;  %v645_v16 = vld [vmem:[%s788_s1 + $0x38] sm:$0xff]   ;;  %v19_v17 = vld [vmem:[%s790_s0 + $0x10] sm:$0xff]  ;;  %v647_v20 = vld [vmem:[%s788_s1 + $0x40] sm:$0xff]   ;;  %v290_v57 = vand.u32 15, %v270_v56 }
   0x7   :  { %580 = vmatpush3.bf16.msra.mxu0 %v638_v1  ;;  %v20_v18 = vld [vmem:[%s790_s0 + $0x18] sm:$0xff]  ;;  %v656_v19 = vld [vmem:[%s788_s1 + $0xb0] sm:$0xff]   ;;  %v649_v23 = vld [vmem:[%s788_s1 + $0x48] sm:$0xff]   ;;  %v297_v61 = vand.u32 15, %v271_v58  ;;  %vm320_vm3 = vcmp.eq.s32.totalorder %v276_v59, 0  ;;  %v283_v62 = vand.u32 15, %v269_v60 }
   0x8   :  { %581 = vmatprep.subr.bf16.mxu0 %v639_v2  ;;  %600 = vmatpush3.bf16.msra.mxu1 %v646_v8  ;;  %v22_v21 = vpack.c.bf16 %v20_v18, %v19_v17  ;;  %v658_v22 = vld [vmem:[%s788_s1 + $0xb8] sm:$0xff]   ;;  %v651_v24 = vld [vmem:[%s788_s1 + $0x50] sm:$0xff]   ;;  %v655_v26 = vld [vmem:[%s788_s1 + $0x60] sm:$0xff]   ;;  %vm322_vm2 = vcmp.eq.s32.totalorder %v290_v57, 0 }
   0x9   :  { %601 = vmatprep.subr.bf16.mxu1 %v648_v10  ;;  %v653_v25 = vld [vmem:[%s788_s1 + $0x58] sm:$0xff]   ;;  %v657_v27 = vld [vmem:[%s788_s1 + $0x68] sm:$0xff]   ;;  %v659_v28 = vld [vmem:[%s788_s1 + $0x70] sm:$0xff]   ;;  %vm437_vm4 = vcmp.eq.s32.totalorder %v297_v61, 15  ;;  %vm435_vm5 = vcmp.eq.s32.totalorder %v283_v62, 15 }
   0xa   :  { %v660_v29 = vld [vmem:[%s788_s1 + $0x78] sm:$0xff]  }
   0xb   :  { %582 = vmatpush3.bf16.msra.mxu0 %v639_v2 }
   0xc   :  { %583 = vmatprep.subr.bf16.mxu0 %v640_v4  ;;  %602 = vmatpush3.bf16.msra.mxu1 %v648_v10 }
   0xd   :  { %603 = vmatprep.subr.bf16.mxu1 %v650_v11 }
   0xf   :  { %584 = vmatpush3.bf16.msra.mxu0 %v640_v4 }
  0x10   :  { %585 = vmatprep.subr.bf16.mxu0 %v641_v9  ;;  %604 = vmatpush3.bf16.msra.mxu1 %v650_v11 }
  0x11   :  { %605 = vmatprep.subr.bf16.mxu1 %v652_v13 }
  0x13   :  { %586 = vmatpush3.bf16.msra.mxu0 %v641_v9 }
  0x14   :  { %587 = vmatprep.subr.bf16.mxu0 %v642_v12  ;;  %606 = vmatpush3.bf16.msra.mxu1 %v652_v13 }
  0x15   :  { %607 = vmatprep.subr.bf16.mxu1 %v654_v15 }
  0x17   :  { %588 = vmatpush3.bf16.msra.mxu0 %v642_v12 }
  0x18   :  { %589 = vmatprep.subr.bf16.mxu0 %v643_v14  ;;  %608 = vmatpush3.bf16.msra.mxu1 %v654_v15 }
  0x19   :  { %609 = vmatprep.subr.bf16.mxu1 %v656_v19 }
  0x1b   :  { %590 = vmatpush3.bf16.msra.mxu0 %v643_v14 }
  0x1c   :  { %591 = vmatprep.subr.bf16.mxu0 %v645_v16  ;;  %610 = vmatpush3.bf16.msra.mxu1 %v656_v19 }
  0x1d   :  { %611 = vmatprep.subr.bf16.mxu1 %v658_v22 }
  0x1f   :  { %592 = vmatpush3.bf16.msra.mxu0 %v645_v16 }
  0x20   :  { %617 = vmatprep.subr.bf16.mxu0 %v647_v20  ;;  %612 = vmatpush3.bf16.msra.mxu1 %v658_v22 }
  0x22   :  { %594 = vmatmul.mubr.bf16.vlgmr.msra.gmra.mrb[0].mxu0 %v22_v21 }
  0x23   :  { %618 = vmatpush3.bf16.msra.mxu0 %v647_v20  ;;  %633 = vmatprep.mubr.bf16.mxu0 %v21_v7 }
  0x24   :  { %619 = vmatprep.subr.bf16.mxu0 %v649_v23  ;;  %614 = vmatmul.mubr.bf16.vlgmr.msra.gmra.mrb[0].mxu1 %v22_v21 }
  0x27   :  { %620 = vmatpush3.bf16.msra.mxu0 %v649_v23 }
  0x28   :  { %621 = vmatprep.subr.bf16.mxu0 %v651_v24 }
  0x2b   :  { %622 = vmatpush3.bf16.msra.mxu0 %v651_v24 }
  0x2c   :  { %623 = vmatprep.subr.bf16.mxu0 %v653_v25 }
  0x2f   :  { %624 = vmatpush3.bf16.msra.mxu0 %v653_v25 }
  0x30   :  { %625 = vmatprep.subr.bf16.mxu0 %v655_v26 }
  0x33   :  { %626 = vmatpush3.bf16.msra.mxu0 %v655_v26 }
  0x34   :  { %627 = vmatprep.subr.bf16.mxu0 %v657_v27 }
  0x37   :  { %628 = vmatpush3.bf16.msra.mxu0 %v657_v27 }
  0x38   :  { %629 = vmatprep.subr.bf16.mxu0 %v659_v28 }
  0x3b   :  { %630 = vmatpush3.bf16.msra.mxu0 %v659_v28 }
  0x3c   :  { %631 = vmatprep.subr.bf16.mxu0 %v660_v29 }
  0x3f   :  { %632 = vmatpush3.bf16.msra.mxu0 %v660_v29 }
  0x42   :  { %634 = vmatmul.mubr.bf16.vlgmr.msra.gmra.mrb[4].mxu0 %v22_v21 }
  0xf5   :  { %v595_v31 = vpop.f32.mrb[0].mxu0 }
  0xf6   :  { %v326_v33 = vrot.slane %v595_v31, 7  ;;  %v121_v34 = vpop.f32.mrb[1].mxu0 }
  0xf7   :  { %v324_v35 = vrot.slane %v121_v34, 7  ;;  %v596_v36 = vpop.f32.mrb[2].mxu0  ;;  %v615_v44 = vpop.f32.mrb[0].mxu1 }
  0xf8   :  { %v327_v37 = vrot.slane %v596_v36, 7  ;;  %v124_v38 = vpop.f32.mrb[3].mxu0  ;;  %v440_v45 = vrot.slane %v615_v44, 1  ;;  %v252_v46 = vpop.f32.mrb[1].mxu1 }
  0xf9   :  { %v325_v39 = vrot.slane %v124_v38, 7  ;;  %v438_v47 = vrot.slane %v252_v46, 1  ;;  %v616_v48 = vpop.f32.mrb[2].mxu1 }
  0xfa   :  { %v332_v40 = vsel %vm328_vm0, %v327_v37, %v324_v35  ;;  %v329_v41 = vsel %vm328_vm0, %v326_v33, %v327_v37  ;;  %v441_v49 = vrot.slane %v616_v48, 1  ;;  %v255_v50 = vpop.f32.mrb[3].mxu1 }
  0xfb   :  { %v330_v42 = vsel %vm328_vm0, %v325_v39, %v326_v33  ;;  %v331_v43 = vsel %vm328_vm0, %v324_v35, %v325_v39  ;;  %v439_v51 = vrot.slane %v255_v50, 1  ;;  %v333_v2 = vsel %vm320_vm3, 0.0, %v332_v40 }
  0xfc   :  { %v443_v52 = vsel %vm442_vm1, %v440_v45, %v441_v49  ;;  %v446_v53 = vsel %vm442_vm1, %v441_v49, %v438_v47  ;;  %v335_v63 = vsel %vm322_vm2, 0.0, %v330_v42 }
  0xfd   :  { %v444_v54 = vsel %vm442_vm1, %v439_v51, %v440_v45  ;;  %v445_v55 = vsel %vm442_vm1, %v438_v47, %v439_v51  ;;  %v450_v10 = vsel %vm437_vm4, 0.0, %v446_v53 }
  0xfe   :  { %v448_v13 = vsel %vm435_vm5, 0.0, %v444_v54 }
 0x115   :  { %v635_v0 = vpop.f32.mrb[4].mxu0 }
 0x116   :  { %v428_v1 = vadd.f32 %v635_v0, %v335_v63  ;;  %v419_v3 = vpop.f32.mrb[5].mxu0 }
 0x117   :  { %v420_v4 = vadd.f32 %v419_v3, %v333_v2  ;;  %v636_v5 = vpop.f32.mrb[6].mxu0 }
 0x118   :  { %v453_v6 = vadd.f32 %v443_v52, %v428_v1  ;;  %v431_v7 = vadd.f32 %v636_v5, %v329_v41  ;;  %v422_v8 = vpop.f32.mrb[7].mxu0 }
 0x119   :  { %v451_v9 = vadd.f32 %v445_v55, %v420_v4  ;;  %v423_v11 = vadd.f32 %v422_v8, %v331_v43 }
 0x11a   :  { %457 = vst [vmem:[%s791_s3 + $0x10] sm:$0xff] %v453_v6  ;;  %v454_v12 = vadd.f32 %v450_v10, %v431_v7  ;;  %v471_v18 = vmul.f32 %v453_v6, %v453_v6 }
 0x11b   :  { %455 = vst [vmem:[%s791_s3] sm:$0xff] %v451_v9  ;;  %v452_v14 = vadd.f32 %v448_v13, %v423_v11  ;;  %v469_v15 = vmul.f32 %v451_v9, %v451_v9 }
 0x11c   :  { %458 = vst [vmem:[%s791_s3 + $0x18] sm:$0xff] %v454_v12  ;;  %v472_v21 = vmul.f32 %v454_v12, %v454_v12 }
 0x11d   :  { %456 = vst [vmem:[%s791_s3 + $0x8] sm:$0xff] %v452_v14  ;;  %v459_v16 = vadd.f32 %v452_v14, %v451_v9  ;;  %v470_v17 = vmul.f32 %v452_v14, %v452_v14 }
 0x11f   :  { %v460_v19 = vadd.f32 %v459_v16, %v453_v6  ;;  %v473_v20 = vadd.f32 %v470_v17, %v469_v15 }
 0x121   :  { %v461_v22 = vadd.f32 %v460_v19, %v454_v12  ;;  %v474_v23 = vadd.f32 %v473_v20, %v471_v18 }
 0x123   :  { %v462_v24 = vrot.slane %v461_v22, 4  ;;  %v475_v25 = vadd.f32 %v474_v23, %v472_v21 }
 0x125   :  { %v463_v26 = vadd.f32 %v462_v24, %v461_v22  ;;  %v476_v27 = vrot.slane %v475_v25, 4 }
 0x127   :  { %v464_v28 = vrot.slane %v463_v26, 2  ;;  %v477_v29 = vadd.f32 %v476_v27, %v475_v25 }
 0x129   :  { %v465_v30 = vadd.f32 %v464_v28, %v463_v26  ;;  %v478_v31 = vrot.slane %v477_v29, 2 }
 0x12b   :  { %v466_v32 = vrot.slane %v465_v30, 1  ;;  %v479_v33 = vadd.f32 %v478_v31, %v477_v29 }
 0x12d   :  { %v467_v34 = vadd.f32 %v466_v32, %v465_v30  ;;  %v480_v35 = vrot.slane %v479_v33, 1 }
 0x12f   :  { %468 = vst [vmem:[%s792_s4] sm:$0x1] %v467_v34  ;;  %v481_v36 = vadd.f32 %v480_v35, %v479_v33 }
 0x131   :  { %482 = vst [vmem:[%s792_s4 + $0x1] sm:$0x1] %v481_v36 }

// kernel: residual_block.4
= control target key start
LH: loop header
LB: loop body
LE: loop exit
PB: predicated region body
PF: predicated region fallthrough
CT: control target
= control target key end

     0   :  { %v289_v44 = vlaneseq  ;;  %s818_s1 = inlined_call_operand.vmem [shape: bf16[3,128,128], index: 1, kind: input, shape index: {}]   ;;  %s819_s0 = inlined_call_operand.vmem [shape: f32[32,128], index: 0, kind: input, shape index: {}]   ;;  %s820_s2 = inlined_call_operand.vmem [shape: f32[2,128], index: 2, kind: input, shape index: {}]   ;;  %s821_s3 = inlined_call_operand.vmem [shape: f32[32,128], index: 3, kind: output, shape index: {0}]   ;;  %s822_s4 = inlined_call_operand.vmem [shape: f32[1,2,128], index: 4, kind: output, shape index: {1}]  }
   0x1   :  { %v661_v0 = vld [vmem:[%s818_s1] sm:$0xff]   ;;  %v662_v1 = vld [vmem:[%s818_s1 + $0x8] sm:$0xff]   ;;  %v663_v2 = vld [vmem:[%s818_s1 + $0x10] sm:$0xff]  }
   0x2   :  { %601 = vmatprep.subr.bf16.mxu0 %v661_v0  ;;  %v668_v3 = vld [vmem:[%s818_s1 + $0x80] sm:$0xff]   ;;  %v664_v4 = vld [vmem:[%s818_s1 + $0x18] sm:$0xff]   ;;  %v18_v6 = vld [vmem:[%s819_s0 + $0x8] sm:$0xff]  ;;  %v290_v46 = vshrl.u32 %v289_v44, 7 }
   0x3   :  { %602 = vmatpush3.bf16.msra.mxu0 %v661_v0  ;;  %621 = vmatprep.subr.bf16.mxu1 %v668_v3  ;;  %v17_v5 = vld [vmem:[%s819_s0] sm:$0xff]  ;;  %v670_v11 = vld [vmem:[%s818_s1 + $0x88] sm:$0xff]   ;;  %v19_v15 = vld [vmem:[%s819_s0 + $0x10] sm:$0xff] }
   0x4   :  { %603 = vmatprep.subr.bf16.mxu0 %v662_v1  ;;  %v513_v7 = vld [vmem:[%s820_s2] ss:$0 sm:$0xff]  ;;  %622 = vmatpush3.bf16.msra.mxu1 %v668_v3  ;;  %v514_v10 = vld [vmem:[%s820_s2 + $0x1] ss:$0 sm:$0xff]  ;;  %v672_v16 = vld [vmem:[%s818_s1 + $0x90] sm:$0xff]   ;;  %vm350_vm0 = vcmp.lt.s32.totalorder %v290_v46, 1 }
   0x5   :  { %v26_v8 = vmul.f32 %v513_v7, %v17_v5  ;;  %v27_v9 = vmul.f32 %v513_v7, %v18_v6  ;;  %v665_v12 = vld [vmem:[%s818_s1 + $0x20] sm:$0xff]   ;;  %623 = vmatprep.subr.bf16.mxu1 %v670_v11  ;;  %v20_v19 = vld [vmem:[%s819_s0 + $0x18] sm:$0xff]  ;;  %v666_v20 = vld [vmem:[%s818_s1 + $0x28] sm:$0xff]   ;;  %v28_v23 = vmul.f32 %v513_v7, %v19_v15  ;;  %vm464_vm1 = vcmp.lt.s32.totalorder %v290_v46, 7 }
   0x6   :  { %v674_v22 = vld [vmem:[%s818_s1 + $0x98] sm:$0xff]   ;;  %v29_v24 = vmul.f32 %v513_v7, %v20_v19  ;;  %v676_v25 = vld [vmem:[%s818_s1 + $0xa0] sm:$0xff]   ;;  %v667_v26 = vld [vmem:[%s818_s1 + $0x30] sm:$0xff]   ;;  %v292_v6 = vadd.s32 16, %v290_v46 }
   0x7   :  { %604 = vmatpush3.bf16.msra.mxu0 %v662_v1  ;;  %v35_v13 = vadd.f32 %v514_v10, %v26_v8  ;;  %v36_v14 = vadd.f32 %v514_v10, %v27_v9  ;;  %v37_v27 = vadd.f32 %v514_v10, %v28_v23  ;;  %v678_v29 = vld [vmem:[%s818_s1 + $0xa8] sm:$0xff]   ;;  %v669_v30 = vld [vmem:[%s818_s1 + $0x38] sm:$0xff]   ;;  %v680_v33 = vld [vmem:[%s818_s1 + $0xb0] sm:$0xff]   ;;  %v293_v8 = vadd.s32 24, %v290_v46 }
   0x8   :  { %605 = vmatprep.subr.bf16.mxu0 %v663_v2  ;;  %624 = vmatpush3.bf16.msra.mxu1 %v670_v11  ;;  %v38_v28 = vadd.f32 %v514_v10, %v29_v24  ;;  %v671_v34 = vld [vmem:[%s818_s1 + $0x40] sm:$0xff]   ;;  %v682_v36 = vld [vmem:[%s818_s1 + $0xb8] sm:$0xff]   ;;  %v673_v37 = vld [vmem:[%s818_s1 + $0x48] sm:$0xff]   ;;  %v312_v7 = vand.u32 15, %v292_v6  ;;  %v298_v9 = vand.u32 15, %v290_v46  ;;  %v291_v10 = vadd.s32 8, %v290_v46 }
   0x9   :  { %v39_v17 = vmax.f32 %v35_v13, 0.0  ;;  %v40_v18 = vmax.f32 %v36_v14, 0.0  ;;  %625 = vmatprep.subr.bf16.mxu1 %v672_v16  ;;  %v41_v31 = vmax.f32 %v37_v27, 0.0  ;;  %v675_v38 = vld [vmem:[%s818_s1 + $0x50] sm:$0xff]   ;;  %v677_v39 = vld [vmem:[%s818_s1 + $0x58] sm:$0xff]   ;;  %v679_v40 = vld [vmem:[%s818_s1 + $0x60] sm:$0xff]  }
   0xa   :  { %v42_v32 = vmax.f32 %v38_v28, 0.0  ;;  %v681_v41 = vld [vmem:[%s818_s1 + $0x68] sm:$0xff]   ;;  %v683_v42 = vld [vmem:[%s818_s1 + $0x70] sm:$0xff]   ;;  %v684_v43 = vld [vmem:[%s818_s1 + $0x78] sm:$0xff]   ;;  %vm344_vm2 = vcmp.eq.s32.totalorder %v312_v7, 0  ;;  %v319_v11 = vand.u32 15, %v293_v8 }
   0xb   :  { %606 = vmatpush3.bf16.msra.mxu0 %v663_v2  ;;  %v43_v21 = vpack.c.bf16 %v40_v18, %v39_v17  ;;  %vm342_vm3 = vcmp.eq.s32.totalorder %v298_v9, 0 }
   0xc   :  { %607 = vmatprep.subr.bf16.mxu0 %v664_v4  ;;  %626 = vmatpush3.bf16.msra.mxu1 %v672_v16  ;;  %v44_v35 = vpack.c.bf16 %v42_v32, %v41_v31  ;;  %vm459_vm4 = vcmp.eq.s32.totalorder %v319_v11, 15 }
   0xd   :  { %617 = vmatprep.mubr.bf16.mxu0 %v43_v21  ;;  %627 = vmatprep.subr.bf16.mxu1 %v674_v22 }
   0xe   :  { %637 = vmatprep.mubr.bf16.mxu1 %v43_v21 }
   0xf   :  { %608 = vmatpush3.bf16.msra.mxu0 %v664_v4 }
  0x10   :  { %609 = vmatprep.subr.bf16.mxu0 %v665_v12  ;;  %628 = vmatpush3.bf16.msra.mxu1 %v674_v22 }
  0x11   :  { %629 = vmatprep.subr.bf16.mxu1 %v676_v25 }
  0x13   :  { %610 = vmatpush3.bf16.msra.mxu0 %v665_v12  ;;  %v305_v12 = vand.u32 15, %v291_v10 }
  0x14   :  { %611 = vmatprep.subr.bf16.mxu0 %v666_v20  ;;  %630 = vmatpush3.bf16.msra.mxu1 %v676_v25 }
  0x15   :  { %631 = vmatprep.subr.bf16.mxu1 %v678_v29  ;;  %vm457_vm5 = vcmp.eq.s32.totalorder %v305_v12, 15 }
  0x17   :  { %612 = vmatpush3.bf16.msra.mxu0 %v666_v20 }
  0x18   :  { %613 = vmatprep.subr.bf16.mxu0 %v667_v26  ;;  %632 = vmatpush3.bf16.msra.mxu1 %v678_v29 }
  0x19   :  { %633 = vmatprep.subr.bf16.mxu1 %v680_v33 }
  0x1b   :  { %614 = vmatpush3.bf16.msra.mxu0 %v667_v26 }
  0x1c   :  { %615 = vmatprep.subr.bf16.mxu0 %v669_v30  ;;  %634 = vmatpush3.bf16.msra.mxu1 %v680_v33 }
  0x1d   :  { %635 = vmatprep.subr.bf16.mxu1 %v682_v36 }
  0x1f   :  { %616 = vmatpush3.bf16.msra.mxu0 %v669_v30 }
  0x20   :  { %641 = vmatprep.subr.bf16.mxu0 %v671_v34  ;;  %636 = vmatpush3.bf16.msra.mxu1 %v682_v36 }
  0x22   :  { %618 = vmatmul.mubr.bf16.vlgmr.msra.gmra.mrb[0].mxu0 %v44_v35 }
  0x23   :  { %642 = vmatpush3.bf16.msra.mxu0 %v671_v34  ;;  %657 = vmatprep.mubr.bf16.mxu0 %v43_v21 }
  0x24   :  { %643 = vmatprep.subr.bf16.mxu0 %v673_v37  ;;  %638 = vmatmul.mubr.bf16.vlgmr.msra.gmra.mrb[0].mxu1 %v44_v35 }
  0x27   :  { %644 = vmatpush3.bf16.msra.mxu0 %v673_v37 }
  0x28   :  { %645 = vmatprep.subr.bf16.mxu0 %v675_v38 }
  0x2b   :  { %646 = vmatpush3.bf16.msra.mxu0 %v675_v38 }
  0x2c   :  { %647 = vmatprep.subr.bf16.mxu0 %v677_v39 }
  0x2f   :  { %648 = vmatpush3.bf16.msra.mxu0 %v677_v39 }
  0x30   :  { %649 = vmatprep.subr.bf16.mxu0 %v679_v40 }
  0x33   :  { %650 = vmatpush3.bf16.msra.mxu0 %v679_v40 }
  0x34   :  { %651 = vmatprep.subr.bf16.mxu0 %v681_v41 }
  0x37   :  { %652 = vmatpush3.bf16.msra.mxu0 %v681_v41 }
  0x38   :  { %653 = vmatprep.subr.bf16.mxu0 %v683_v42 }
  0x3b   :  { %654 = vmatpush3.bf16.msra.mxu0 %v683_v42 }
  0x3c   :  { %655 = vmatprep.subr.bf16.mxu0 %v684_v43 }
  0x3f   :  { %656 = vmatpush3.bf16.msra.mxu0 %v684_v43 }
  0x42   :  { %658 = vmatmul.mubr.bf16.vlgmr.msra.gmra.mrb[4].mxu0 %v44_v35 }
  0xf5   :  { %v619_v45 = vpop.f32.mrb[0].mxu0 }
  0xf6   :  { %v348_v47 = vrot.slane %v619_v45, 7  ;;  %v143_v48 = vpop.f32.mrb[1].mxu0 }
  0xf7   :  { %v346_v49 = vrot.slane %v143_v48, 7  ;;  %v620_v50 = vpop.f32.mrb[2].mxu0  ;;  %v639_v58 = vpop.f32.mrb[0].mxu1 }
  0xf8   :  { %v349_v51 = vrot.slane %v620_v50, 7  ;;  %v146_v52 = vpop.f32.mrb[3].mxu0  ;;  %v462_v59 = vrot.slane %v639_v58, 1  ;;  %v274_v60 = vpop.f32.mrb[1].mxu1 }
  0xf9   :  { %v347_v53 = vrot.slane %v146_v52, 7  ;;  %v460_v61 = vrot.slane %v274_v60, 1  ;;  %v640_v62 = vpop.f32.mrb[2].mxu1 }
  0xfa   :  { %v354_v54 = vsel %vm350_vm0, %v349_v51, %v346_v49  ;;  %v351_v55 = vsel %vm350_vm0, %v348_v47, %v349_v51  ;;  %v463_v63 = vrot.slane %v640_v62, 1  ;;  %v277_v0 = vpop.f32.mrb[3].mxu1 }
  0xfb   :  { %v352_v56 = vsel %vm350_vm0, %v347_v53, %v348_v47  ;;  %v353_v57 = vsel %vm350_vm0, %v346_v49, %v347_v53  ;;  %v461_v1 = vrot.slane %v277_v0, 1  ;;  %v355_v16 = vsel %vm342_vm3, 0.0, %v354_v54 }
  0xfc   :  { %v465_v2 = vsel %vm464_vm1, %v462_v59, %v463_v63  ;;  %v468_v3 = vsel %vm464_vm1, %v463_v63, %v460_v61  ;;  %v357_v13 = vsel %vm344_vm2, 0.0, %v352_v56 }
  0xfd   :  { %v466_v4 = vsel %vm464_vm1, %v461_v1, %v462_v59  ;;  %v467_v5 = vsel %vm464_vm1, %v460_v61, %v461_v1  ;;  %v472_v24 = vsel %vm459_vm4, 0.0, %v468_v3 }
  0xfe   :  { %v470_v27 = vsel %vm457_vm5, 0.0, %v466_v4 }
 0x115   :  { %v659_v14 = vpop.f32.mrb[4].mxu0 }
 0x116   :  { %v450_v15 = vadd.f32 %v659_v14, %v357_v13  ;;  %v441_v17 = vpop.f32.mrb[5].mxu0 }
 0x117   :  { %v442_v18 = vadd.f32 %v441_v17, %v355_v16  ;;  %v660_v19 = vpop.f32.mrb[6].mxu0 }
 0x118   :  { %v475_v20 = vadd.f32 %v465_v2, %v450_v15  ;;  %v453_v21 = vadd.f32 %v660_v19, %v351_v55  ;;  %v444_v22 = vpop.f32.mrb[7].mxu0 }
 0x119   :  { %v473_v23 = vadd.f32 %v467_v5, %v442_v18  ;;  %v445_v25 = vadd.f32 %v444_v22, %v353_v57 }
 0x11a   :  { %479 = vst [vmem:[%s821_s3 + $0x10] sm:$0xff] %v475_v20  ;;  %v476_v26 = vadd.f32 %v472_v24, %v453_v21  ;;  %v493_v32 = vmul.f32 %v475_v20, %v475_v20 }
 0x11b   :  { %477 = vst [vmem:[%s821_s3] sm:$0xff] %v473_v23  ;;  %v474_v28 = vadd.f32 %v470_v27, %v445_v25  ;;  %v491_v29 = vmul.f32 %v473_v23, %v473_v23 }
 0x11c   :  { %480 = vst [vmem:[%s821_s3 + $0x18] sm:$0xff] %v476_v26  ;;  %v494_v35 = vmul.f32 %v476_v26, %v476_v26 }
 0x11d   :  { %478 = vst [vmem:[%s821_s3 + $0x8] sm:$0xff] %v474_v28  ;;  %v481_v30 = vadd.f32 %v474_v28, %v473_v23  ;;  %v492_v31 = vmul.f32 %v474_v28, %v474_v28 }
 0x11f   :  { %v482_v33 = vadd.f32 %v481_v30, %v475_v20  ;;  %v495_v34 = vadd.f32 %v492_v31, %v491_v29 }
 0x121   :  { %v483_v36 = vadd.f32 %v482_v33, %v476_v26  ;;  %v496_v37 = vadd.f32 %v495_v34, %v493_v32 }
 0x123   :  { %v484_v38 = vrot.slane %v483_v36, 4  ;;  %v497_v39 = vadd.f32 %v496_v37, %v494_v35 }
 0x125   :  { %v485_v40 = vadd.f32 %v484_v38, %v483_v36  ;;  %v498_v41 = vrot.slane %v497_v39, 4 }
 0x127   :  { %v486_v42 = vrot.slane %v485_v40, 2  ;;  %v499_v43 = vadd.f32 %v498_v41, %v497_v39 }
 0x129   :  { %v487_v44 = vadd.f32 %v486_v42, %v485_v40  ;;  %v500_v45 = vrot.slane %v499_v43, 2 }
 0x12b   :  { %v488_v46 = vrot.slane %v487_v44, 1  ;;  %v501_v47 = vadd.f32 %v500_v45, %v499_v43 }
 0x12d   :  { %v489_v48 = vadd.f32 %v488_v46, %v487_v44  ;;  %v502_v49 = vrot.slane %v501_v47, 1 }
 0x12f   :  { %490 = vst [vmem:[%s822_s4] sm:$0x1] %v489_v48  ;;  %v503_v50 = vadd.f32 %v502_v49, %v501_v47 }
 0x131   :  { %504 = vst [vmem:[%s822_s4 + $0x1] sm:$0x1] %v503_v50 }

// kernel: residual_block.5
= control target key start
LH: loop header
LB: loop body
LE: loop exit
PB: predicated region body
PF: predicated region fallthrough
CT: control target
= control target key end

     0   :  { %s120_s0 = inlined_call_operand.vmem [shape: f32[32,128], index: 0, kind: input, shape index: {}, may-alias: {0,3}]   ;;  %s121_s1 = inlined_call_operand.vmem [shape: f32[32,128], index: 1, kind: input, shape index: {}]   ;;  %s122_s2 = inlined_call_operand.vmem [shape: f32[2,128], index: 2, kind: input, shape index: {}]   ;;  %s123_s3 = inlined_call_operand.vmem [shape: f32[32,128], index: 3, kind: output, shape index: {}, may-alias: {0,3}]  }
   0x1   :  { %v14_v0 = vld [vmem:[%s120_s0] sm:$0xff]  ;;  %v15_v4 = vld [vmem:[%s120_s0 + $0x8] sm:$0xff]  ;;  %v16_v7 = vld [vmem:[%s120_s0 + $0x10] sm:$0xff] }
   0x2   :  { %v56_v1 = vld [vmem:[%s122_s2] ss:$0 sm:$0xff]  ;;  %v57_v2 = vld [vmem:[%s122_s2 + $0x1] ss:$0 sm:$0xff]  ;;  %v17_v8 = vld [vmem:[%s120_s0 + $0x18] sm:$0xff] }
   0x3   :  { %v23_v3 = vmul.f32 %v56_v1, %v14_v0  ;;  %v36_v5 = vld [vmem:[%s121_s1] sm:$0xff]  ;;  %v24_v6 = vmul.f32 %v56_v1, %v15_v4  ;;  %v37_v10 = vld [vmem:[%s121_s1 + $0x8] sm:$0xff]  ;;  %v25_v11 = vmul.f32 %v56_v1, %v16_v7  ;;  %v26_v12 = vmul.f32 %v56_v1, %v17_v8  ;;  %v38_v14 = vld [vmem:[%s121_s1 + $0x10] sm:$0xff] }
   0x4   :  { %v39_v15 = vld [vmem:[%s121_s1 + $0x18] sm:$0xff] }
   0x5   :  { %v32_v9 = vadd.f32 %v57_v2, %v23_v3  ;;  %v33_v13 = vadd.f32 %v57_v2, %v24_v6  ;;  %v34_v17 = vadd.f32 %v57_v2, %v25_v11  ;;  %v35_v18 = vadd.f32 %v57_v2, %v26_v12 }
   0x7   :  { %v40_v16 = vadd.f32 %v36_v5, %v32_v9  ;;  %v41_v19 = vadd.f32 %v37_v10, %v33_v13  ;;  %v42_v21 = vadd.f32 %v38_v14, %v34_v17  ;;  %v43_v22 = vadd.f32 %v39_v15, %v35_v18 }
   0x9   :  { %v44_v20 = vmax.f32 %v40_v16, 0.0  ;;  %v45_v23 = vmax.f32 %v41_v19, 0.0  ;;  %v46_v24 = vmax.f32 %v42_v21, 0.0  ;;  %v47_v25 = vmax.f32 %v43_v22, 0.0 }
   0xb   :  { %48 = vst [vmem:[%s123_s3] sm:$0xff] %v44_v20  ;;  %49 = vst [vmem:[%s123_s3 + $0x8] sm:$0xff] %v45_v23 }
   0xc   :  { %50 = vst [vmem:[%s123_s3 + $0x10] sm:$0xff] %v46_v24  ;;  %51 = vst [vmem:[%s123_s3 + $0x18] sm:$0xff] %v47_v25 }

</bundles_post_ra>
